<compile_context>
chip_gen: v5e
topology: v5e:2x2
jax: 0.10.0
libtpu: 0.0.40
codegen_flags: <defaults>
</compile_context>

<pallas_src>
import jax
import jax.numpy as jnp
from jax.experimental import pallas as pl
from jax.experimental.pallas import tpu as pltpu


def _round_up(x, m):
    return ((x + m - 1) // m) * m


def _make_mean_pool_kernel(*, ts, th, seq_len, acc_rows):
    s_has_tail = (seq_len % ts) != 0

    def kernel(h_ref, m_ref, o_ref, acc_ref):
        # h_ref:   (TS, TH)       hidden tile, native dtype
        # m_ref:   (TS, 1)        mask column tile, f32 (sublane-aligned with h)
        # o_ref:   (1, TH)        output tile (f32), resident across the S axis
        # acc_ref: (acc_rows, TH) f32 accumulator scratch
        s_idx = pl.program_id(2)

        @pl.when(s_idx == 0)
        def _init():
            acc_ref[...] = jnp.zeros_like(acc_ref)

        # One widen per tile (v5e VPU has no native bf16); accumulate in f32.
        h = h_ref[...].astype(jnp.float32)          # (TS, TH)
        m = m_ref[...]                              # (TS, 1) f32

        if s_has_tail:
            # Neutralize out-of-bounds rows of the last S block.  Mask AND
            # hidden are zeroed so NaN/Inf garbage cannot survive 0 * NaN.
            row = jax.lax.broadcasted_iota(jnp.int32, (ts, 1), 0)
            valid = (s_idx * ts + row) < seq_len
            m = jnp.where(valid, m, 0.0)
            h = jnp.where(valid, h, 0.0)

        # VPU multiply; (TS,1) column lane-broadcasts across TH for free.
        prod = h * m                                # (TS, TH) f32

        if acc_rows == 8:
            # Fold TS rows down to 8 sublanes with pure vreg adds (VPU);
            # the single cross-sublane reduce happens once, in the finalize.
            folded = prod[0:8, :]
            for i in range(1, ts // 8):
                folded = folded + prod[i * 8:(i + 1) * 8, :]
            acc_ref[...] += folded
        else:
            acc_ref[...] += jnp.sum(prod, axis=0, keepdims=True)

        @pl.when(s_idx == pl.num_programs(2) - 1)
        def _finalize():
            o_ref[...] = jnp.sum(acc_ref[...], axis=0, keepdims=True)

    return kernel


def mean_pooling(last_hidden_state, attention_mask, *,
                 max_th=8192, tile_bytes=4 * 1024 * 1024, max_ts=2048):
    """Pallas TPU implementation of MeanPooling.forward.

    last_hidden_state: [B, S, H] float (f32 or bf16)
    attention_mask:    [B, S]    any numeric dtype
    returns:           [B, H]    float32
    """
    B, S, H = last_hidden_state.shape
    assert attention_mask.shape == (B, S)
    itemsize = jnp.dtype(last_hidden_state.dtype).itemsize

    # ---- hidden-dim tile: full H (contiguous DMA, lane-dense output, no pad)
    # unless H is enormous; then a 128-multiple tile (partial last block is
    # handled by Pallas, garbage only lands in discarded output columns).
    TH = H if H <= max_th else max_th
    n_h = -(-H // TH)

    # v7x megacore: keep >= 2 parallel blocks so the second TensorCore works.
    if B * n_h < 2 and H >= 256:
        TH = _round_up(-(-H // 2), 128)
        n_h = -(-H // TH)

    # ---- sequence tile: sized by a per-buffer VMEM byte budget (Pallas
    # double-buffers the hidden input); multiple of 8 sublanes, or full S.
    ts = tile_bytes // max(TH * itemsize, 1)
    ts = max(8, min(ts, max_ts))
    ts = (ts // 8) * 8
    TS = S if ts >= S else ts
    n_s = -(-S // TS)
    acc_rows = 8 if TS % 8 == 0 else 1

    mask_f = attention_mask.astype(jnp.float32)     # PyTorch uses .float()
    mask_col = mask_f.reshape(B, S, 1)              # (TS,1) blocks, sublane-aligned

    kernel = _make_mean_pool_kernel(ts=TS, th=TH, seq_len=S, acc_rows=acc_rows)

    pooled = pl.pallas_call(
        kernel,
        out_shape=jax.ShapeDtypeStruct((B, 1, H), jnp.float32),
        grid_spec=pltpu.PrefetchScalarGridSpec(
            num_scalar_prefetch=0,
            grid=(B, n_h, n_s),
            in_specs=[
                pl.BlockSpec((None, TS, TH), lambda b, hh, s: (b, s, hh)),
                pl.BlockSpec((None, TS, 1), lambda b, hh, s: (b, s, 0)),
            ],
            out_specs=pl.BlockSpec((None, 1, TH), lambda b, hh, s: (b, 0, hh)),
            scratch_shapes=[pltpu.VMEM((acc_rows, TH), jnp.float32)],
        ),
        compiler_params=pltpu.CompilerParams(
            dimension_semantics=("parallel", "parallel", "arbitrary")),
    )(last_hidden_state, mask_col)

    # Per-batch clamp + divide on the tiny (B, H) output (hoisted out of the
    # bandwidth-bound inner loop).
    denom = jnp.maximum(jnp.sum(mask_f, axis=1, keepdims=True), 1e-9)  # (B, 1)
    return pooled.reshape(B, H) / denom


def mean_pooling_ref(last_hidden_state, attention_mask):
    """Pure-JAX reference matching the PyTorch module."""
    m = attention_mask[:, :, None].astype(jnp.float32)
    s = jnp.sum(last_hidden_state.astype(jnp.float32) * m, axis=1)
    sm = jnp.maximum(jnp.sum(m, axis=1), 1e-9)
    return s / sm


if __name__ == "__main__":
    B, S, H = 2, 8, 32
    key = jax.random.PRNGKey(0)
    k1, k2 = jax.random.split(key)

    last_hidden_state = jax.random.normal(k1, (B, S, H), dtype=jnp.float32)
    # Integer 0/1 attention mask (like a tokenizer would produce).
    attention_mask = (jax.random.uniform(k2, (B, S)) > 0.3).astype(jnp.int32)

    out = mean_pooling(last_hidden_state, attention_mask)
    out = jax.block_until_ready(out)

    ref = mean_pooling_ref(last_hidden_state, attention_mask)
    assert out.shape == (B, H)
    assert jnp.allclose(out, ref, atol=1e-5, rtol=1e-5), "mismatch vs reference"

    print("KERNEL_OK")
</pallas_src>

<mosaic_0001>
module attributes {stable_mosaic.version = 11 : i64} {
  func.func @kernel(%arg0: i32, %arg1: i32, %arg2: i32, %arg3: memref<1x8x32xf32, #tpu.memory_space<vmem>>, %arg4: memref<1x8x1xf32, #tpu.memory_space<vmem>>, %arg5: memref<1x1x32xf32, #tpu.memory_space<vmem>>, %arg6: memref<8x32xf32, #tpu.memory_space<vmem>>) attributes {dimension_semantics = [#tpu.dimension_semantics<parallel>, #tpu.dimension_semantics<parallel>, #tpu.dimension_semantics<arbitrary>], iteration_bounds = array<i64: 2, 1, 1>, scalar_prefetch = 0 : i64, scratch_operands = 1 : i64, tpu.core_type = #tpu.core_type<tc>, window_params = [{transform_indices = @transform_0, window_bounds = array<i64: 1, 8, 32>}, {transform_indices = @transform_1, window_bounds = array<i64: 1, 8, 1>}, {transform_indices = @transform_2, window_bounds = array<i64: 1, 1, 32>}]} {
    %c0_i32 = arith.constant 0 : i32
    %0 = arith.cmpi eq, %arg2, %c0_i32 : i32
    %1 = arith.extui %0 : i1 to i32
    %c0_i32_0 = arith.constant 0 : i32
    %2 = arith.cmpi ne, %1, %c0_i32_0 : i32
    scf.if %2 {
      %cst = arith.constant 0.000000e+00 : f32
      %15 = vector.broadcast %cst : f32 to vector<8x32xf32>
      %c0_12 = arith.constant 0 : index
      %c0_13 = arith.constant 0 : index
      %16 = vector.load %arg6[%c0_12, %c0_13] : memref<8x32xf32, #tpu.memory_space<vmem>>, vector<8x32xf32>
      tpu.vector_store %arg6[%c0_12, %c0_13], %15 {strides = array<i32>} : memref<8x32xf32, #tpu.memory_space<vmem>>, vector<8x32xf32>,
    } else {
    }
    %c0 = arith.constant 0 : index
    %c0_1 = arith.constant 0 : index
    %c0_2 = arith.constant 0 : index
    %3 = vector.load %arg3[%c0, %c0_1, %c0_2] : memref<1x8x32xf32, #tpu.memory_space<vmem>>, vector<1x8x32xf32>
    %4 = vector.shape_cast %3 : vector<1x8x32xf32> to vector<8x32xf32>
    %c0_3 = arith.constant 0 : index
    %c0_4 = arith.constant 0 : index
    %c0_5 = arith.constant 0 : index
    %5 = vector.load %arg4[%c0_3, %c0_4, %c0_5] : memref<1x8x1xf32, #tpu.memory_space<vmem>>, vector<1x8x1xf32>
    %6 = vector.shape_cast %5 : vector<1x8x1xf32> to vector<8x1xf32>
    %7 = vector.broadcast %6 : vector<8x1xf32> to vector<8x32xf32>
    %8 = arith.mulf %4, %7 : vector<8x32xf32>
    %c0_6 = arith.constant 0 : index
    %c0_7 = arith.constant 0 : index
    %9 = vector.load %arg6[%c0_6, %c0_7] : memref<8x32xf32, #tpu.memory_space<vmem>>, vector<8x32xf32>
    %10 = arith.addf %9, %8 : vector<8x32xf32>
    %c0_8 = arith.constant 0 : index
    %c0_9 = arith.constant 0 : index
    %11 = vector.load %arg6[%c0_8, %c0_9] : memref<8x32xf32, #tpu.memory_space<vmem>>, vector<8x32xf32>
    tpu.vector_store %arg6[%c0_8, %c0_9], %10 {strides = array<i32>} : memref<8x32xf32, #tpu.memory_space<vmem>>, vector<8x32xf32>,
    %c0_i32_10 = arith.constant 0 : i32
    %12 = arith.cmpi eq, %arg2, %c0_i32_10 : i32
    %13 = arith.extui %12 : i1 to i32
    %c0_i32_11 = arith.constant 0 : i32
    %14 = arith.cmpi ne, %13, %c0_i32_11 : i32
    scf.if %14 {
      %c0_12 = arith.constant 0 : index
      %c0_13 = arith.constant 0 : index
      %15 = vector.load %arg6[%c0_12, %c0_13] : memref<8x32xf32, #tpu.memory_space<vmem>>, vector<8x32xf32>
      %cst = arith.constant dense<0.000000e+00> : vector<32xf32>
      %16 = vector.multi_reduction <add>, %15, %cst [0] : vector<8x32xf32> to vector<32xf32>
      %17 = vector.shape_cast %16 : vector<32xf32> to vector<1x32xf32>
      %c0_14 = arith.constant 0 : index
      %c0_15 = arith.constant 0 : index
      %c0_16 = arith.constant 0 : index
      %18 = vector.load %arg5[%c0_14, %c0_15, %c0_16] : memref<1x1x32xf32, #tpu.memory_space<vmem>>, vector<1x1x32xf32>
      %19 = vector.shape_cast %18 : vector<1x1x32xf32> to vector<1x32xf32>
      %20 = vector.shape_cast %17 : vector<1x32xf32> to vector<1x1x32xf32>
      tpu.vector_store %arg5[%c0_14, %c0_15, %c0_16], %20 {strides = array<i32>} : memref<1x1x32xf32, #tpu.memory_space<vmem>>, vector<1x1x32xf32>,
    } else {
    }
    return
  }
  func.func @transform_0(%arg0: i32, %arg1: i32, %arg2: i32) -> (i32, i32, i32) {
    %c0_i32 = arith.constant 0 : i32
    return %arg0, %arg2, %arg1 : i32, i32, i32
  }
  func.func @transform_1(%arg0: i32, %arg1: i32, %arg2: i32) -> (i32, i32, i32) {
    %c0_i32 = arith.constant 0 : i32
    %c0_i32_0 = arith.constant 0 : i32
    return %arg0, %arg2, %c0_i32 : i32, i32, i32
  }
  func.func @transform_2(%arg0: i32, %arg1: i32, %arg2: i32) -> (i32, i32, i32) {
    %c0_i32 = arith.constant 0 : i32
    %c0_i32_0 = arith.constant 0 : i32
    return %arg0, %c0_i32, %arg1 : i32, i32, i32
  }
}

</mosaic_0001>

<bundles_post_ra>
// kernel: tpu_custom_call.1
= control target key start
LH: loop header
LB: loop body
LE: loop exit
PB: predicated region body
PF: predicated region fallthrough
CT: control target
= control target key end

     0   :  { %7 = vsyncpa [#allocation4], 0  ;;  %s609_s0 = inlined_call_operand.vmem [shape: f32[2,8,32], index: 0, kind: input, shape index: {}]   ;;  %s610_s1 = inlined_call_operand.vmem [shape: f32[2,8,1], index: 1, kind: input, shape index: {}]   ;;  %s611_s2 = inlined_call_operand.hbm [shape: f32[2,1,32], index: 2, kind: output, shape index: {}]  }
   0x1   :  { %9 = vsyncpa [#allocation4 + $0x1], 0  ;;  %s506_s9 = smov 0   ;;  %s508_s10 = smov 0  }
   0x2   :  { %s510_s11 = smov 0   ;;  %s512_s12 = smov 0  }
   0x3   :  { %s514_s13 = smov 0   ;;  %s516_s14 = smov 0  }
   0x4 LB: > { %s342_s15 = sadd.s32 4294967295, %s487_s14   ;;  %s343_s16 = sadd.s32 4294967294, %s487_s14   ;;  %s487_s14 = sphi %s516_s14, %s15_s14   ;;  %s483_s13 = sphi %s514_s13, %s618_s13   ;;  %s479_s12 = sphi %s512_s12, %s617_s12   ;;  %s475_s11 = sphi %s510_s11, %s616_s11   ;;  %s471_s10 = sphi %s508_s10, %s615_s10   ;;  %s467_s9 = sphi %s506_s9, %s614_s9  }
   0x5   : > { %s34_s17 = sadd.s32 1, %s483_s13  ;;  %s101_s18 = sadd.s32 1, %s475_s11 }
   0x6   : > { %p36_p0 = scmp.ge.s32.totalorder %s34_s17, 2  ;;  %p111_p1 = scmp.ne.s32.totalorder %s475_s11, %s471_s10 }
   0x7   : > { %p112_p2 = scmp.eq.s32.totalorder %s342_s15, 1  ;;  %p117_p3 = scmp.ne.s32.totalorder %s471_s10, %s467_s9 }
   0x8   : > { %s620_s17 = smov (%p36_p0, %s34_s17), 0  ;;  %p118_p5 = scmp.eq.s32.totalorder %s343_s16, 1 }
   0x9   : > { %p546_p4 = por %p112_p2, %p111_p1  ;;  %s96_s20 = ssub.s32 %s483_s13, %s620_s17 }
   0xa   : > { %p346_p6 = scmp.ge.s32.totalorder %s487_s14, 1  ;;  %p99_p7 = scmp.eq.s32.totalorder %s96_s20, 0 }
   0xb   : > { %p553_p8 = por %p118_p5, %p117_p3  ;;  %p159_p9 = scmp.lt.s32.totalorder %s487_s14, 3 }
   0xc   : > { %s559_s22 = scalar_select %p99_p7, %s475_s11, %s101_s18  }
   0xd   : > { %p160_p10 = pnand %p346_p6, %p159_p9 }
   0xe   : > { %p192_p11 = scmp.lt.s32.totalorder (!%p160_p10), %s479_s12, 1  ;;  %s190_s3 = sand.u32 (!%p160_p10), 1, %s471_s10  }
   0xf   : > { %163 = sbr.rel (%p160_p10) target bundleno = 168 (0xa8), region = 28  ;;  %s250_s6 = scalar_lea.hbm (!%p160_p10), %s611_s2, %s479_s12 }
  0x10   : > { %s191_s7 = scalar_lea.vmem (!%p160_p10), [#allocation3], %s190_s3  ;;  %s254_s15 = sshll.u32 (!%p160_p10), %s250_s6, 4  ;;  %s255_s15 = int_to_ptr.hbm [resolvable:$true] %s254_s15 }
  0x11   : > { %s252_s8 = sshll.u32 (!%p160_p10), %s191_s7, 4  ;;  %s241_s16 = scalar_lea.sflag (!%p160_p10), [#allocation4], %s190_s3  ;;  %s253_s8 = int_to_ptr.vmem [resolvable:$true] %s252_s8 }
  0x12   : > { %s423_s18 = sshra.s32 (!%p160_p10), %s255_s15, 4  ;;  %s424_s18 = int_to_ptr.hbm [resolvable:$true] %s423_s18 }
  0x13   : > { %s425_s20 = scalar_lea.hbm (!%p160_p10), %s424_s18, 1  ;;  %p430_p1 = scmp.lt.s32.totalorder (!%p160_p10), %s424_s18, %s611_s2 }
  0x14   : > { %vm213_vm0 = vcmask 261120   ;;  %v489_v0 = vmov 0   ;;  %v490_v1 = vmov 0.0   ;;  %s193_s23 = scalar_select %p192_p11, %s479_s12, 1  ;;  %vm238_vm1 = vcmask 253952  }
  0x15   : > { %408 = vset.pattern.permute.xlu0 %v489_v0  ;;  %214 = vst.msk [vmem:[#allocation2] sm:$0xff] %vm213_vm0, %v490_v1  ;;  %p426_p12 = scmp.ne.s32.totalorder %s424_s18, %s425_s20 }
  0x16   : > { %s347_s24 = sshll.u32 %s193_s23, 3 }
  0x17   : > { %s208_s27 = scalar_lea.vmem %s610_s1, %s347_s24  ;;  %s201_s30 = scalar_lea.vmem %s609_s0, %s347_s24 }
  0x18   : > { %v216_v2 = vld [vmem:[%s208_s27] sm:$0xff]  ;;  %p427_p13 = pnand %p426_p12, %p546_p4  ;;  %s429_s24 = scalar_lea.hbm %s611_s2, 2 }
  0x19   : > { %219 = vperm.xlu0 %408, %v216_v2   ;;  %v215_v3 = vld [vmem:[%s201_s30] sm:$0xff]  ;;  %p431_p2 = scmp.lt.s32.totalorder %s429_s24, %s425_s20 }
  0x1a   : > { %p428_p0 = pneg %p427_p13 }
  0x1b   : > { %p432_p3 = por %p431_p2, %p430_p1 }
  0x1c   : > { %v223_v4 = vld [vmem:[#allocation2] sm:$0xff] }
  0x1d   : > { %p433_p5 = pnand %p432_p3, %p428_p0 }
  0x8b   : > { %v220_v5 = vpop.permute.xlu0 %219 }
  0x8c   : > { %v222_v6 = vmul.f32 %v220_v5, %v215_v3 }
  0x8e   : > { %v224_v7 = vadd.f32 %v223_v4, %v222_v6 }
  0x90   : > { %226 = vst.msk [vmem:[#allocation2] sm:$0xff] %vm213_vm0, %v224_v7 }
  0x97   : > { %v230_v8 = vld [vmem:[#allocation2] sm:$0xff] }
  0x98   : > { %v231_v9 = vsel %vm213_vm0, %v230_v8, 0.0 }
  0x99   : > { %v232_v10 = vrot.slane %v231_v9, 4 }
  0x9b   : > { %v233_v11 = vadd.f32 %v232_v10, %v231_v9 }
  0x9d   : > { %v234_v12 = vrot.slane %v233_v11, 2 }
  0x9f   : > { %v235_v13 = vadd.f32 %v234_v12, %v233_v11 }
  0xa1   : > { %v236_v14 = vrot.slane %v235_v13, 1 }
  0xa3   : > { %v237_v15 = vadd.f32 %v236_v14, %v235_v13 }
  0xa5   : > { %239 = vst.msk [vmem:[%s191_s7] sm:$0x1] %vm238_vm1, %v237_v15 }
  0xa6   : > { %436 = shalt.err (!%p433_p5)
}
  0xa7   : > { %351 = dma.vmem_to_hbm [thread:$0]  (%p546_p4), %s253_s8, 16, %s255_s15, %s241_s16  }
  0xa8 PF: > { %p357_p6 = scmp.ge.s32.totalorder %s487_s14, 2  ;;  %s266_s27 = sand.u32 1, %s467_s9  }
  0xa9   : > { %s267_s28 = scalar_lea.sflag [#allocation4], %s266_s27 }
  0xaa   : > { %p354_p7 = pnand %p357_p6, %p553_p8 }
  0xac   : > { %p355_p9 = pneg %p354_p7 }
  0xae   : > { %462 = dma.done.wait (%p355_p9), %s267_s28, 16  }
  0xaf   : > { %464 = vsyncadd (%p355_p9), %s267_s28, 4294967280  ;;  %s15_s14 = sadd.s32 1, %s487_s14   ;;  %s614_s9 = smov %s471_s10 }
  0xb0   : > { %p12_p10 = scmp.ge.s32.totalorder %s15_s14, 4   ;;  %s615_s10 = smov %s475_s11 }
  0xb1   : > { %s616_s11 = smov %s559_s22  ;;  %s617_s12 = smov %s483_s13 }
  0xb2   : > { %s618_s13 = smov %s620_s17  ;;  %14 = sbr.rel (!%p12_p10) target bundleno = 4 (0x4), region = 74 }
  0xb7   :  { %272 = vsyncpa [#allocation4], 1 }
  0xb8   :  { %274 = vsyncpa [#allocation4 + $0x1], 1 }

</bundles_post_ra>
